<compile_context>
chip_gen: v6e
topology: v6e:2x2x1
jax: 0.10.0
libtpu: 0.0.40
codegen_flags: <defaults>
</compile_context>

<pallas_src>
import jax
import jax.numpy as jnp
from jax.experimental import pallas as pl
from jax.experimental.pallas import tpu as pltpu


def _round_up(x: int, m: int) -> int:
    return ((x + m - 1) // m) * m


def _linear_kernel(x_ref, wt_ref, b_ref, o_ref):
    # x_ref : (TB, K)  VMEM  activation tile (streams along the batch grid axis)
    # wt_ref: (K,  N)  VMEM  pre-transposed weight (constant index -> resident)
    # b_ref : (1,  N)  VMEM  bias row (broadcast over the TB rows)
    # o_ref : (TB, N)  VMEM  output tile
    acc = jnp.dot(x_ref[...], wt_ref[...], preferred_element_type=jnp.float32)
    o_ref[...] = (acc + b_ref[...]).astype(o_ref.dtype)


def prepare_linear_params(weight, bias, compute_dtype=None):
    """One-time parameter transform (do this at init, NOT per forward call).

    weight : (size_output, size_input)  -- PyTorch nn.Linear convention
    bias   : (size_output,)
    Returns:
      wt : (size_input, size_output)  weight transposed (no padding)
      b2 : (1, size_output)           bias as an f32 row
    """
    dtype = compute_dtype if compute_dtype is not None else weight.dtype
    wt = jnp.asarray(weight).T.astype(dtype)                  # (K, N)
    b2 = jnp.asarray(bias).astype(jnp.float32).reshape(1, -1)  # (1, N)
    return wt, b2


def _vmem_limit_bytes() -> int:
    """Generation-aware scoped-VMEM limit (v7x has 64 MiB/TC; v5e/v6e 128 MiB)."""
    try:
        cap = int(pltpu.get_tpu_info().vmem_capacity_bytes)
    except Exception:
        cap = 32 << 20  # conservative fallback
    return min(cap // 2, 64 << 20)


def _pick_batch_tile(batch: int, k: int, n: int, itemsize: int,
                     tile_budget: int) -> int:
    """Largest batch tile (multiple of 8 sublanes) that keeps double-buffered
    x/out tiles + resident weight/bias under the VMEM budget, while ensuring
    >= 2 grid steps for large batches (v7x megacore sharding)."""
    tb_max = _round_up(max(batch, 1), 8)
    hard_cap = 4096
    if batch >= 2048:
        # Keep at least two grid steps so the "parallel" axis can shard
        # across v7x's two TensorCores (no-op on single-TC v5e/v6e).
        hard_cap = min(hard_cap, max(512, _round_up(pl.cdiv(batch, 2), 8)))
    tb = max(_round_up(min(tb_max, hard_cap), 8), 8)
    while tb > 8:
        need = (2 * tb * (k + n) * itemsize   # double-buffered x + out tiles
                + 2 * k * n * itemsize        # weight (worst case x2)
                + 2 * n * 4)                  # bias
        if need <= tile_budget:
            break
        tb = max(_round_up(tb // 2, 8), 8)
    return tb


@jax.jit
def linear_output_layer(x, wt, bias_row):
    """Forward pass: y = x @ W^T + b, using pre-transformed parameters.

    x        : (batch, size_input)
    wt       : (size_input, size_output)   from prepare_linear_params
    bias_row : (1, size_output)            from prepare_linear_params
    returns  : (batch, size_output)
    """
    batch, size_input = x.shape
    k, n_out = wt.shape
    assert k == size_input

    vmem_limit = _vmem_limit_bytes()
    tile_budget = max(vmem_limit - (2 << 20), 4 << 20)
    tb = _pick_batch_tile(batch, k, n_out, jnp.dtype(x.dtype).itemsize,
                          tile_budget)

    grid = (pl.cdiv(batch, tb),)  # ragged last tile handled by Pallas masking

    out = pl.pallas_call(
        _linear_kernel,
        out_shape=jax.ShapeDtypeStruct((batch, n_out), x.dtype),
        grid_spec=pltpu.PrefetchScalarGridSpec(
            num_scalar_prefetch=0,
            grid=grid,
            in_specs=[
                # activation tile streams along the batch grid axis;
                # last dim equals the full array dim (no 128-lane padding).
                pl.BlockSpec((tb, size_input), lambda i: (i, 0)),
                # weight + bias: constant block index -> VMEM-resident.
                pl.BlockSpec((size_input, n_out), lambda i: (0, 0)),
                pl.BlockSpec((1, n_out), lambda i: (0, 0)),
            ],
            out_specs=pl.BlockSpec((tb, n_out), lambda i: (i, 0)),
        ),
        compiler_params=pltpu.CompilerParams(
            dimension_semantics=("parallel",),   # independent batch tiles
            vmem_limit_bytes=vmem_limit,
        ),
    )(x, wt, bias_row)

    return out


if __name__ == "__main__":
    # Deterministic synthetic parameters (init_weights / init_bias stand-ins).
    key = jax.random.PRNGKey(0)
    k_x, k_w, k_b = jax.random.split(key, 3)

    batch = 8
    size_input = 32
    size_output = 16

    x = jax.random.normal(k_x, (batch, size_input), dtype=jnp.float32)
    bound = 1.0 / (size_input ** 0.5)
    weight = jax.random.uniform(
        k_w, (size_output, size_input), minval=-bound, maxval=bound,
        dtype=jnp.float32,
    )
    bias = jax.random.uniform(
        k_b, (size_output,), minval=-bound, maxval=bound, dtype=jnp.float32
    )

    # One-time parameter transform (hoisted out of the forward path).
    wt, bias_row = prepare_linear_params(weight, bias)

    out = linear_output_layer(x, wt, bias_row)
    out = jax.block_until_ready(out)

    # Cross-check against plain JAX reference.
    ref = x @ weight.T + bias
    assert out.shape == (batch, size_output)
    assert jnp.allclose(out, ref, atol=1e-5, rtol=1e-5)

    print("KERNEL_OK")
</pallas_src>

<mosaic_0001>
module attributes {stable_mosaic.version = 11 : i64} {
  func.func @_linear_kernel(%arg0: i32, %arg1: memref<8x32xf32, #tpu.memory_space<vmem>>, %arg2: memref<32x16xf32, #tpu.memory_space<vmem>>, %arg3: memref<1x16xf32, #tpu.memory_space<vmem>>, %arg4: memref<8x16xf32, #tpu.memory_space<vmem>>) attributes {dimension_semantics = [#tpu.dimension_semantics<parallel>], iteration_bounds = array<i64: 1>, scalar_prefetch = 0 : i64, scratch_operands = 0 : i64, tpu.core_type = #tpu.core_type<tc>, window_params = [{transform_indices = @transform_0, window_bounds = array<i64: 8, 32>}, {pipeline_mode = #tpu.pipeline_mode<synchronous>, transform_indices = @transform_1, window_bounds = array<i64: 32, 16>}, {pipeline_mode = #tpu.pipeline_mode<synchronous>, transform_indices = @transform_2, window_bounds = array<i64: 1, 16>}, {transform_indices = @transform_3, window_bounds = array<i64: 8, 16>}]} {
    %c0 = arith.constant 0 : index
    %c0_0 = arith.constant 0 : index
    %0 = vector.load %arg1[%c0, %c0_0] : memref<8x32xf32, #tpu.memory_space<vmem>>, vector<8x32xf32>
    %c0_1 = arith.constant 0 : index
    %c0_2 = arith.constant 0 : index
    %1 = vector.load %arg2[%c0_1, %c0_2] : memref<32x16xf32, #tpu.memory_space<vmem>>, vector<32x16xf32>
    %cst = arith.constant dense<0.000000e+00> : vector<8x16xf32>
    %2 = tpu.matmul %0, %1, %cst {dimension_numbers = #tpu.dot_dimension_numbers<[1], [0], [0], [1], [0, 0, 1, 1], [], []>} : vector<8x32xf32>, vector<32x16xf32>, vector<8x16xf32> -> vector<8x16xf32>
    %c0_3 = arith.constant 0 : index
    %c0_4 = arith.constant 0 : index
    %3 = vector.load %arg3[%c0_3, %c0_4] : memref<1x16xf32, #tpu.memory_space<vmem>>, vector<1x16xf32>
    %4 = vector.broadcast %3 : vector<1x16xf32> to vector<8x16xf32>
    %5 = arith.addf %2, %4 : vector<8x16xf32>
    %c0_5 = arith.constant 0 : index
    %c0_6 = arith.constant 0 : index
    %6 = vector.load %arg4[%c0_5, %c0_6] : memref<8x16xf32, #tpu.memory_space<vmem>>, vector<8x16xf32>
    tpu.vector_store %arg4[%c0_5, %c0_6], %5 {strides = array<i32>} : memref<8x16xf32, #tpu.memory_space<vmem>>, vector<8x16xf32>,
    return
  }
  func.func @transform_0(%arg0: i32) -> (i32, i32) {
    %c0_i32 = arith.constant 0 : i32
    %c0_i32_0 = arith.constant 0 : i32
    return %arg0, %c0_i32 : i32, i32
  }
  func.func @transform_1(%arg0: i32) -> (i32, i32) {
    %c0_i32 = arith.constant 0 : i32
    %c0_i32_0 = arith.constant 0 : i32
    %c0_i32_1 = arith.constant 0 : i32
    return %c0_i32, %c0_i32_0 : i32, i32
  }
  func.func @transform_2(%arg0: i32) -> (i32, i32) {
    %c0_i32 = arith.constant 0 : i32
    %c0_i32_0 = arith.constant 0 : i32
    %c0_i32_1 = arith.constant 0 : i32
    return %c0_i32, %c0_i32_0 : i32, i32
  }
  func.func @transform_3(%arg0: i32) -> (i32, i32) {
    %c0_i32 = arith.constant 0 : i32
    %c0_i32_0 = arith.constant 0 : i32
    return %arg0, %c0_i32 : i32, i32
  }
}

</mosaic_0001>

<bundles_post_ra>
// kernel: linear_output_layer.1
= control target key start
LH: loop header
LB: loop body
LE: loop exit
PB: predicated region body
PF: predicated region fallthrough
CT: control target
= control target key end

     0   :  { %v160_v1 = vmov 0.0   ;;  %vm161_vm0 = vmmov 0   ;;  %s204_s0 = inlined_call_operand.vmem [shape: f32[8,32], index: 0, kind: input, shape index: {}]   ;;  %s205_s1 = inlined_call_operand.vmem [shape: f32[32,16], index: 1, kind: input, shape index: {}]   ;;  %s206_s2 = inlined_call_operand.vmem [shape: f32[1,16], index: 2, kind: input, shape index: {}]   ;;  %s207_s3 = inlined_call_operand.hbm [shape: f32[8,16], index: 3, kind: output, shape index: {}]  }
   0x1   :  { %v19_v0 = vld [vmem:[%s205_s1 + $0x18] sm:$0xff]  ;;  %124 = vmatprep.subr.mxu0 %v160_v1  ;;  %v18_v2 = vld [vmem:[%s205_s1 + $0x10] sm:$0xff]  ;;  %132 = vmatprep.mubr.msk.f32.mxu0 %vm161_vm0, %v160_v1 }
   0x2   :  { %125 = vmatpush3.msra.mxu0 %v19_v0 }
   0x3   :  { %8 = vsyncpa [#allocation3], 0  ;;  %126 = vmatprep.subr.mxu0 %v160_v1  ;;  %v17_v3 = vld [vmem:[%s205_s1 + $0x8] sm:$0xff]  ;;  %v16_v4 = vld [vmem:[%s205_s1] sm:$0xff]  ;;  %vm27_vm1 = vcmask 261120   ;;  %s162_s24 = smov [#allocation2]  }
   0x4   :  { %127 = vmatpush3.msra.mxu0 %v18_v2  ;;  %v15_v5 = vld [vmem:[%s204_s0] sm:$0xff]  ;;  %s109_s25 = sshll.u32 %s162_s24, 4  ;;  %vm101_vm2 = vcmask 130048   ;;  %s110_s25 = int_to_ptr.vmem [resolvable:$true] %s109_s25 }
   0x5   :  { %128 = vmatprep.subr.mxu0 %v160_v1  ;;  %v117_v6 = vld [vmem:[%s206_s2] ss:$0 sm:$0xff]  ;;  %s138_s1 = scalar_lea.vmem %s110_s25, 128  ;;  %p143_p1 = scmp.lt.s32.totalorder %s110_s25, %s110_s25 }
   0x6   :  { %129 = vmatpush3.msra.mxu0 %v17_v3  ;;  %p139_p0 = scmp.ne.s32.totalorder %s110_s25, %s138_s1  ;;  %p144_p2 = scmp.lt.s32.totalorder %s138_s1, %s138_s1 }
   0x7   :  { %130 = vmatprep.subr.mxu0 %v160_v1 }
   0x8   :  { %131 = vmatpush3.msra.mxu0 %v16_v4  ;;  %p145_p3 = por %p144_p2, %p143_p1 }
   0x9   :  { %133 = vmatmul.mubr.msk.f32.vlgmr.msra.gmra.mxu0 %vm27_vm1, %v15_v5 }
   0xa   :  { %p146_p4 = pnand %p145_p3, %p139_p0 }
  0xc9   :  { %v97_v7 = vpop.f32.mrf.mxu0 }
  0xca   :  { %v98_v8 = vadd.f32 %v117_v6, %v97_v7 }
  0xcb   :  { %v134_v9 = vpop.f32.mrf.mxu0 }
  0xcc   :  { %102 = vst.msk [vmem:[#allocation2] sm:$0xff] %vm101_vm2, %v98_v8 }
  0xcd   :  { %149 = shalt.err (!%p146_p4)
}
  0xce   :  { %112 = dma.vmem_to_hbm [thread:$0]  %s110_s25, 128, %s207_s3, [#allocation3]  }
  0xcf   :  { %158 = dma.done.wait [#allocation3], 128  }
  0xd0   :  { %159 = vsyncadd [#allocation3], 4294967168 }
  0xd1   :  { %116 = vsyncpa [#allocation3], 1 }

</bundles_post_ra>
